<compile_context>
chip_gen: v7x
topology: tpu7x:2x2x1
jax: 0.10.0
libtpu: 0.0.40
codegen_flags: <defaults>
</compile_context>

<pallas_src>
import functools

import jax
import jax.numpy as jnp
from jax import lax
from jax.experimental import pallas as pl
from jax.experimental.pallas import tpu as pltpu


def _focal_loss_kernel(pred_ref, true_ref, out_ref, acc_ref, *,
                       gamma, alpha, total, rt, W, K, has_pad):
    p = pl.program_id(0)   # partial-sum (parallel) axis
    k = pl.program_id(1)   # reduction (arbitrary) axis

    @pl.when(k == 0)
    def _():
        acc_ref[...] = jnp.zeros_like(acc_ref)

    x = pred_ref[...].astype(jnp.float32)
    y = true_ref[...].astype(jnp.float32)

    # Shared transcendental: e = exp(-|x|) feeds both the numerically stable
    # BCE-with-logits log term and the sigmoid.
    e = jnp.exp(-jnp.abs(x))
    bce = jnp.maximum(x, 0.0) - x * y + jnp.log1p(e)

    inv = 1.0 / (1.0 + e)
    prob = jnp.where(x >= 0.0, inv, e * inv)          # sigmoid(x)

    p_t = y * prob + (1.0 - y) * (1.0 - prob)
    alpha_factor = y * alpha + (1.0 - y) * (1.0 - alpha)
    t = 1.0 - p_t
    if gamma == 1.5:
        mod = t * jnp.sqrt(t)                         # t**1.5 without exp(log())
    elif float(gamma) == int(gamma):
        mod = t ** int(gamma)                         # integer_pow -> multiplies
    else:
        mod = t ** gamma

    loss = bce * alpha_factor * mod

    if has_pad:
        # Zero out contributions from the padded tail of the flattened slab.
        base = (p * K + k) * (rt * W)
        flat = (base
                + lax.broadcasted_iota(jnp.int32, (rt, W), 0) * W
                + lax.broadcasted_iota(jnp.int32, (rt, W), 1))
        loss = jnp.where(flat < total, loss, 0.0)

    # Pure elementwise accumulate (VPU); no per-step cross-lane reduce.
    acc_ref[...] += loss

    @pl.when(k == pl.num_programs(1) - 1)
    def _():
        partial = jnp.sum(acc_ref[...])               # one XLU reduce per partial
        out_ref[...] = jnp.full((1, 1, 128), partial, jnp.float32)


def focal_loss(pred: jax.Array, true: jax.Array, *,
               gamma: float = 1.5, alpha: float = 0.25,
               lane_width: int = 1024, row_tile: int = 256,
               num_partials: int = 2) -> jax.Array:
    """Pallas focal loss with 'mean' reduction. pred/true: (N, num_classes)."""
    assert pred.shape == true.shape
    total = int(pred.size)
    W = int(lane_width)                               # multiple of 128
    P = max(1, int(num_partials))

    cdiv = lambda a, b: -(-a // b)
    rows = cdiv(total, W)
    rt = min(int(row_tile), max(8, cdiv(rows, 8) * 8))  # multiple of 8
    rows_padded = cdiv(rows, P * rt) * (P * rt)
    K = rows_padded // (P * rt)
    padded_total = rows_padded * W
    pad = padded_total - total

    flat_pred = jnp.ravel(pred)
    flat_true = jnp.ravel(true)
    if pad:
        flat_pred = jnp.pad(flat_pred, (0, pad))
        flat_true = jnp.pad(flat_true, (0, pad))
    pred2 = flat_pred.reshape(rows_padded, W)
    true2 = flat_true.reshape(rows_padded, W)

    kernel = functools.partial(
        _focal_loss_kernel, gamma=gamma, alpha=alpha, total=total,
        rt=rt, W=W, K=K, has_pad=bool(pad))

    partials = pl.pallas_call(
        kernel,
        out_shape=jax.ShapeDtypeStruct((P, 1, 128), jnp.float32),
        grid_spec=pltpu.PrefetchScalarGridSpec(
            num_scalar_prefetch=0,
            grid=(P, K),
            in_specs=[
                pl.BlockSpec((rt, W), lambda p, k: (p * K + k, 0)),
                pl.BlockSpec((rt, W), lambda p, k: (p * K + k, 0)),
            ],
            out_specs=pl.BlockSpec((1, 1, 128), lambda p, k: (p, 0, 0)),
            scratch_shapes=[pltpu.VMEM((rt, W), jnp.float32)],
        ),
        compiler_params=pltpu.CompilerParams(
            dimension_semantics=("parallel", "arbitrary")),
    )(pred2, true2)

    return jnp.sum(partials[:, 0, 0]) / jnp.float32(total)


def _focal_loss_ref(pred, true, gamma=1.5, alpha=0.25):
    x = pred.astype(jnp.float32)
    y = true.astype(jnp.float32)
    bce = jnp.maximum(x, 0.0) - x * y + jnp.log1p(jnp.exp(-jnp.abs(x)))
    p = jax.nn.sigmoid(x)
    p_t = y * p + (1 - y) * (1 - p)
    alpha_factor = y * alpha + (1 - y) * (1 - alpha)
    mod = (1.0 - p_t) ** gamma
    return jnp.mean(bce * alpha_factor * mod)


if __name__ == "__main__":
    key = jax.random.PRNGKey(0)

    # Small shape matching the module spec: pred/true are (N, num_classes).
    k_pred, k_true, key = jax.random.split(key, 3)
    N, num_classes = 16, 32
    pred = jax.random.normal(k_pred, (N, num_classes), dtype=jnp.float32)
    true = (jax.random.uniform(k_true, (N, num_classes)) > 0.5).astype(jnp.float32)

    loss = jax.block_until_ready(focal_loss(pred, true))
    ref = _focal_loss_ref(pred, true)
    assert jnp.allclose(loss, ref, rtol=1e-4, atol=1e-6), (loss, ref)

    # Larger, non-divisible shape: exercises multi-step reduction (K > 1),
    # padding mask, and both partial-sum lanes.
    k_pred2, k_true2, key = jax.random.split(key, 3)
    N2, C2 = 1024, 513
    pred2 = jax.random.normal(k_pred2, (N2, C2), dtype=jnp.float32)
    true2 = (jax.random.uniform(k_true2, (N2, C2)) > 0.5).astype(jnp.float32)

    loss2 = jax.block_until_ready(focal_loss(pred2, true2))
    ref2 = _focal_loss_ref(pred2, true2)
    assert jnp.allclose(loss2, ref2, rtol=1e-4, atol=1e-6), (loss2, ref2)

    print("KERNEL_OK")
</pallas_src>

<mosaic_0001>
module attributes {stable_mosaic.version = 11 : i64} {
  func.func @_focal_loss_kernel(%arg0: i32, %arg1: i32, %arg2: memref<8x1024xf32, #tpu.memory_space<vmem>>, %arg3: memref<8x1024xf32, #tpu.memory_space<vmem>>, %arg4: memref<1x1x128xf32, #tpu.memory_space<vmem>>, %arg5: memref<8x1024xf32, #tpu.memory_space<vmem>>) attributes {dimension_semantics = [#tpu.dimension_semantics<parallel>, #tpu.dimension_semantics<arbitrary>], iteration_bounds = array<i64: 2, 1>, scalar_prefetch = 0 : i64, scratch_operands = 1 : i64, tpu.core_type = #tpu.core_type<tc>, window_params = [{transform_indices = @transform_0, window_bounds = array<i64: 8, 1024>}, {transform_indices = @transform_1, window_bounds = array<i64: 8, 1024>}, {transform_indices = @transform_2, window_bounds = array<i64: 1, 1, 128>}]} {
    %c0_i32 = arith.constant 0 : i32
    %0 = arith.cmpi eq, %arg1, %c0_i32 : i32
    %1 = arith.extui %0 : i1 to i32
    %c0_i32_0 = arith.constant 0 : i32
    %2 = arith.cmpi ne, %1, %c0_i32_0 : i32
    scf.if %2 {
      %cst_21 = arith.constant 0.000000e+00 : f32
      %63 = vector.broadcast %cst_21 : f32 to vector<8x1024xf32>
      %c0_22 = arith.constant 0 : index
      %c0_23 = arith.constant 0 : index
      %64 = vector.load %arg5[%c0_22, %c0_23] : memref<8x1024xf32, #tpu.memory_space<vmem>>, vector<8x1024xf32>
      tpu.vector_store %arg5[%c0_22, %c0_23], %63 {strides = array<i32>} : memref<8x1024xf32, #tpu.memory_space<vmem>>, vector<8x1024xf32>,
    } else {
    }
    %c0 = arith.constant 0 : index
    %c0_1 = arith.constant 0 : index
    %3 = vector.load %arg2[%c0, %c0_1] : memref<8x1024xf32, #tpu.memory_space<vmem>>, vector<8x1024xf32>
    %c0_2 = arith.constant 0 : index
    %c0_3 = arith.constant 0 : index
    %4 = vector.load %arg3[%c0_2, %c0_3] : memref<8x1024xf32, #tpu.memory_space<vmem>>, vector<8x1024xf32>
    %5 = math.absf %3 : vector<8x1024xf32>
    %cst = arith.constant 0.000000e+00 : f32
    %6 = vector.broadcast %cst : f32 to vector<8x1024xf32>
    %7 = arith.subf %6, %5 : vector<8x1024xf32>
    %8 = math.exp %7 : vector<8x1024xf32>
    %cst_4 = arith.constant 0.000000e+00 : f32
    %9 = vector.broadcast %cst_4 : f32 to vector<8x1024xf32>
    %10 = arith.maximumf %3, %9 : vector<8x1024xf32>
    %11 = arith.mulf %3, %4 : vector<8x1024xf32>
    %12 = arith.subf %10, %11 : vector<8x1024xf32>
    %13 = math.log1p %8 : vector<8x1024xf32>
    %14 = arith.addf %12, %13 : vector<8x1024xf32>
    %cst_5 = arith.constant 1.000000e+00 : f32
    %15 = vector.broadcast %cst_5 : f32 to vector<8x1024xf32>
    %16 = arith.addf %15, %8 : vector<8x1024xf32>
    %cst_6 = arith.constant 1.000000e+00 : f32
    %17 = vector.broadcast %cst_6 : f32 to vector<8x1024xf32>
    %18 = arith.divf %17, %16 : vector<8x1024xf32>
    %cst_7 = arith.constant 0.000000e+00 : f32
    %19 = vector.broadcast %cst_7 : f32 to vector<8x1024xf32>
    %20 = arith.cmpf oge, %3, %19 : vector<8x1024xf32>
    %21 = arith.mulf %8, %18 : vector<8x1024xf32>
    %22 = arith.select %20, %18, %21 : vector<8x1024xi1>, vector<8x1024xf32>
    %23 = arith.mulf %4, %22 : vector<8x1024xf32>
    %cst_8 = arith.constant 1.000000e+00 : f32
    %24 = vector.broadcast %cst_8 : f32 to vector<8x1024xf32>
    %25 = arith.subf %24, %4 : vector<8x1024xf32>
    %cst_9 = arith.constant 1.000000e+00 : f32
    %26 = vector.broadcast %cst_9 : f32 to vector<8x1024xf32>
    %27 = arith.subf %26, %22 : vector<8x1024xf32>
    %28 = arith.mulf %25, %27 : vector<8x1024xf32>
    %29 = arith.addf %23, %28 : vector<8x1024xf32>
    %cst_10 = arith.constant 2.500000e-01 : f32
    %30 = vector.broadcast %cst_10 : f32 to vector<8x1024xf32>
    %31 = arith.mulf %4, %30 : vector<8x1024xf32>
    %cst_11 = arith.constant 1.000000e+00 : f32
    %32 = vector.broadcast %cst_11 : f32 to vector<8x1024xf32>
    %33 = arith.subf %32, %4 : vector<8x1024xf32>
    %cst_12 = arith.constant 7.500000e-01 : f32
    %34 = vector.broadcast %cst_12 : f32 to vector<8x1024xf32>
    %35 = arith.mulf %33, %34 : vector<8x1024xf32>
    %36 = arith.addf %31, %35 : vector<8x1024xf32>
    %cst_13 = arith.constant 1.000000e+00 : f32
    %37 = vector.broadcast %cst_13 : f32 to vector<8x1024xf32>
    %38 = arith.subf %37, %29 : vector<8x1024xf32>
    %39 = math.sqrt %38 : vector<8x1024xf32>
    %40 = arith.mulf %38, %39 : vector<8x1024xf32>
    %41 = arith.mulf %14, %36 : vector<8x1024xf32>
    %42 = arith.mulf %41, %40 : vector<8x1024xf32>
    %c1_i32 = arith.constant 1 : i32
    %43 = arith.muli %arg0, %c1_i32 : i32
    %44 = arith.addi %43, %arg1 : i32
    %c8192_i32 = arith.constant 8192 : i32
    %45 = arith.muli %44, %c8192_i32 : i32
    %46 = tpu.iota {dimensions = array<i32: 0>} : vector<8x1024xi32>
    %c1024_i32 = arith.constant 1024 : i32
    %47 = vector.broadcast %c1024_i32 : i32 to vector<8x1024xi32>
    %48 = arith.muli %46, %47 : vector<8x1024xi32>
    %49 = vector.broadcast %45 : i32 to vector<8x1024xi32>
    %50 = arith.addi %49, %48 : vector<8x1024xi32>
    %51 = tpu.iota {dimensions = array<i32: 1>} : vector<8x1024xi32>
    %52 = arith.addi %50, %51 : vector<8x1024xi32>
    %c512_i32 = arith.constant 512 : i32
    %53 = vector.broadcast %c512_i32 : i32 to vector<8x1024xi32>
    %54 = arith.cmpi slt, %52, %53 : vector<8x1024xi32>
    %cst_14 = arith.constant 0.000000e+00 : f32
    %55 = vector.broadcast %cst_14 : f32 to vector<8x1024xf32>
    %56 = arith.select %54, %42, %55 : vector<8x1024xi1>, vector<8x1024xf32>
    %c0_15 = arith.constant 0 : index
    %c0_16 = arith.constant 0 : index
    %57 = vector.load %arg5[%c0_15, %c0_16] : memref<8x1024xf32, #tpu.memory_space<vmem>>, vector<8x1024xf32>
    %58 = arith.addf %57, %56 : vector<8x1024xf32>
    %c0_17 = arith.constant 0 : index
    %c0_18 = arith.constant 0 : index
    %59 = vector.load %arg5[%c0_17, %c0_18] : memref<8x1024xf32, #tpu.memory_space<vmem>>, vector<8x1024xf32>
    tpu.vector_store %arg5[%c0_17, %c0_18], %58 {strides = array<i32>} : memref<8x1024xf32, #tpu.memory_space<vmem>>, vector<8x1024xf32>,
    %c0_i32_19 = arith.constant 0 : i32
    %60 = arith.cmpi eq, %arg1, %c0_i32_19 : i32
    %61 = arith.extui %60 : i1 to i32
    %c0_i32_20 = arith.constant 0 : i32
    %62 = arith.cmpi ne, %61, %c0_i32_20 : i32
    scf.if %62 {
      %c0_21 = arith.constant 0 : index
      %c0_22 = arith.constant 0 : index
      %63 = vector.load %arg5[%c0_21, %c0_22] : memref<8x1024xf32, #tpu.memory_space<vmem>>, vector<8x1024xf32>
      %64 = vector.shape_cast %63 : vector<8x1024xf32> to vector<1x8x1024xf32>
      %cst_23 = arith.constant dense<0.000000e+00> : vector<1xf32>
      %65 = vector.multi_reduction <add>, %64, %cst_23 [1, 2] : vector<1x8x1024xf32> to vector<1xf32>
      %66 = vector.shape_cast %65 : vector<1xf32> to vector<1x1x1xf32>
      %67 = vector.extract %66[0, 0, 0] : f32 from vector<1x1x1xf32>
      %68 = vector.broadcast %67 : f32 to vector<1x1x128xf32>
      %c0_24 = arith.constant 0 : index
      %c0_25 = arith.constant 0 : index
      %c0_26 = arith.constant 0 : index
      %69 = vector.load %arg4[%c0_24, %c0_25, %c0_26] : memref<1x1x128xf32, #tpu.memory_space<vmem>>, vector<1x1x128xf32>
      tpu.vector_store %arg4[%c0_24, %c0_25, %c0_26], %68 {strides = array<i32>} : memref<1x1x128xf32, #tpu.memory_space<vmem>>, vector<1x1x128xf32>,
    } else {
    }
    return
  }
  func.func @transform_0(%arg0: i32, %arg1: i32) -> (i32, i32) {
    %c1_i32 = arith.constant 1 : i32
    %0 = arith.muli %arg0, %c1_i32 : i32
    %1 = arith.addi %0, %arg1 : i32
    %c0_i32 = arith.constant 0 : i32
    %c0_i32_0 = arith.constant 0 : i32
    return %1, %c0_i32 : i32, i32
  }
  func.func @transform_1(%arg0: i32, %arg1: i32) -> (i32, i32) {
    %c1_i32 = arith.constant 1 : i32
    %0 = arith.muli %arg0, %c1_i32 : i32
    %1 = arith.addi %0, %arg1 : i32
    %c0_i32 = arith.constant 0 : i32
    %c0_i32_0 = arith.constant 0 : i32
    return %1, %c0_i32 : i32, i32
  }
  func.func @transform_2(%arg0: i32, %arg1: i32) -> (i32, i32, i32) {
    %c0_i32 = arith.constant 0 : i32
    %c0_i32_0 = arith.constant 0 : i32
    %c0_i32_1 = arith.constant 0 : i32
    return %arg0, %c0_i32, %c0_i32_0 : i32, i32, i32
  }
}

</mosaic_0001>

<bundles_post_ra>
// kernel: tpu_custom_call.1
= control target key start
LH: loop header
LB: loop body
LE: loop exit
PB: predicated region body
PF: predicated region fallthrough
CT: control target
= control target key end

     0   :  { %7 = vsyncpa [#allocation4], 0  ;;  %s1847_s0 = inlined_call_operand.hbm [shape: f32[16,1024], index: 0, kind: input, shape index: {}]   ;;  %s1848_s1 = inlined_call_operand.hbm [shape: f32[16,1024], index: 1, kind: input, shape index: {}]   ;;  %s1849_s2 = inlined_call_operand.hbm [shape: f32[2,1,128], index: 2, kind: output, shape index: {}]  }
   0x1   :  { %9 = vsyncpa [#allocation4 + $0x1], 0 }
   0x2   :  { %10 = vsyncpa [#allocation7], 0 }
   0x3   :  { %12 = vsyncpa [#allocation7 + $0x1], 0 }
   0x4   :  { %13 = vsyncpa [#allocation5], 0 }
   0x5   :  { %15 = vsyncpa [#allocation5 + $0x1], 0  ;;  %s1104_s9 = smov 0   ;;  %s1106_s10 = smov 0  }
   0x6   :  { %s1108_s11 = smov 0   ;;  %s1110_s12 = smov 0  }
   0x7   :  { %s1112_s13 = smov 0   ;;  %s1114_s14 = smov 0  }
   0x8 LB: > { %s786_s15 = sadd.s32 4294967295, %s1084_s14   ;;  %s787_s16 = sadd.s32 4294967294, %s1084_s14   ;;  %s1084_s14 = sphi %s1114_s14, %s21_s14   ;;  %s1080_s13 = sphi %s1112_s13, %s1934_s13   ;;  %s1076_s12 = sphi %s1110_s12, %s1933_s12   ;;  %s1072_s11 = sphi %s1108_s11, %s1932_s11   ;;  %s1068_s10 = sphi %s1106_s10, %s1931_s10   ;;  %s1064_s9 = sphi %s1104_s9, %s1930_s9  }
   0x9   : > { %s33_s17 = sadd.s32 1, %s1080_s13  ;;  %s42_s18 = sadd.s32 1, %s1072_s11 }
   0xa   : > { %p35_p0 = scmp.ge.s32.totalorder %s33_s17, 2  ;;  %p49_p1 = scmp.ne.s32.totalorder %s1072_s11, %s1068_s10 }
   0xb   : > { %p50_p2 = scmp.eq.s32.totalorder %s1084_s14, 0  ;;  %p55_p3 = scmp.ne.s32.totalorder %s1068_s10, %s1064_s9 }
   0xc   : > { %s1936_s17 = smov (%p35_p0, %s33_s17), 0  ;;  %p56_p5 = scmp.eq.s32.totalorder %s786_s15, 0 }
   0xd   : > { %p1145_p4 = por %p50_p2, %p49_p1  ;;  %s39_s20 = ssub.s32 %s1080_s13, %s1936_s17 }
   0xe   : > { %p107_p6 = scmp.eq.s32.totalorder %s786_s15, 1  ;;  %p40_p7 = scmp.eq.s32.totalorder %s39_s20, 0 }
   0xf   : > { %p1151_p8 = por %p56_p5, %p55_p3  ;;  %p113_p10 = scmp.eq.s32.totalorder %s787_s16, 1 }
  0x10   : > { %p1155_p9 = por %p107_p6, %p49_p1  ;;  %p824_p13 = scmp.lt.s32.totalorder %s1084_s14, 2 }
  0x11   : > { %s1858_s21 = scalar_select %p1151_p8, 1, 0 }
  0x12   : > { %s1859_s22 = scalar_select %p1155_p9, 1, 0 }
  0x13   : > { %s1160_s23 = scalar_select %p40_p7, %s1072_s11, %s42_s18  }
  0x14   : > { %p1162_p11 = por %p113_p10, %p55_p3  ;;  %s1169_s25 = sand.u32 1, %s1072_s11  }
  0x15   : > { %s790_s26 = sshll.u32 %s1169_s25, 6  ;;  %s803_s27 = sshll.u32 %s1080_s13, 10 }
  0x16   : > { %s1860_s24 = scalar_select %p1162_p11, 1, 0 }
  0x17   : > { %s1178_s30 = scalar_lea.hbm %s1847_s0, %s803_s27  ;;  %s137_s3 = scalar_lea.vmem [#allocation3], %s790_s26 }
  0x18   : > { %s146_s4 = sshll.u32 %s137_s3, 4  ;;  %p1186_p0 = pnand %p824_p13, %p1145_p4  ;;  %s1182_s4 = int_to_ptr.vmem [resolvable:$true] %s146_s4 }
  0x19   : > { %s134_s6 = scalar_lea.sflag [#allocation4], %s1169_s25  ;;  %s938_s7 = scalar_lea.hbm %s1178_s30, 1024 }
  0x1a   : > { %p939_p3 = scmp.ne.s32.totalorder %s1178_s30, %s938_s7  ;;  %p940_p5 = pneg %p1186_p0 }
  0x1b   : > { %s943_s16 = scalar_lea.hbm %s1847_s0, 2048  ;;  %p944_p4 = scmp.lt.u32.totalorder %s1178_s30, %s1847_s0 }
  0x1c   : > { %p941_p6 = pnand %p940_p5, %p939_p3  ;;  %p945_p10 = scmp.lt.u32.totalorder %s943_s16, %s938_s7 }
  0x1d   : > { %p947_p12 = scmp.lt.u32.totalorder %s938_s7, %s1178_s30 }
  0x1e   : > { %p942_p7 = pneg %p941_p6  ;;  %p946_p13 = por %p945_p10, %p944_p4 }
  0x20   : > { %p948_p1 = por %p947_p12, %p946_p13 }
  0x22   : > { %p949_p2 = pnand %p948_p1, %p942_p7 }
  0x24   : > { %952 = shalt.err (!%p949_p2)
}
  0x25   : > { %s953_s20 = scalar_lea.vmem %s1182_s4, 1024  ;;  %s1086_s28 = smov [#allocation3]  }
  0x26   : > { %p954_p3 = scmp.ne.s32.totalorder %s1182_s4, %s953_s20  ;;  %s958_s29 = sshll.u32 %s1086_s28, 4  ;;  %s959_s29 = int_to_ptr.vmem [resolvable:$false] %s958_s29 }
  0x27   : > { %s960_s3 = scalar_lea.vmem %s959_s29, 2048  ;;  %p961_p9 = scmp.lt.s32.totalorder %s1182_s4, %s959_s29 }
  0x28   : > { %p956_p6 = pnand %p954_p3, %p940_p5  ;;  %p962_p4 = scmp.lt.s32.totalorder %s960_s3, %s953_s20 }
  0x2a   : > { %p957_p11 = pneg %p956_p6  ;;  %p963_p10 = por %p962_p4, %p961_p9 }
  0x2c   : > { %p964_p12 = pnand %p963_p10, %p957_p11 }
  0x2e   : > { %967 = shalt.err (!%p964_p12)
}
  0x2f   : > { %816 = dma.hbm_to_vmem [thread:$0]  (!%p1186_p0), %s1178_s30, 1024, %s1182_s4, %s134_s6  }
  0x30   : > { %p1862_p1 = scmp.lt.s32.totalorder %s1084_s14, 3  ;;  %p1863_p2 = scmp.ge.s32.totalorder %s1084_s14, 1 }
  0x31   : > { %s1231_s16 = scalar_lea.hbm %s1848_s1, %s803_s27  ;;  %s157_s18 = scalar_lea.vmem [#allocation6], %s790_s26 }
  0x32   : > { %p1222_p7 = pnand %p1863_p2, %p1862_p1  ;;  %s166_s19 = sshll.u32 %s157_s18, 4  ;;  %s167_s19 = int_to_ptr.vmem [resolvable:$true] %s166_s19 }
  0x33   : > { %s154_s30 = scalar_lea.sflag [#allocation7], %s1169_s25  ;;  %s968_s4 = scalar_lea.hbm %s1231_s16, 1024 }
  0x34   : > { %s1864_s7 = scalar_select %p1222_p7, 1, 0 }
  0x35   : > { %p969_p9 = scmp.ne.s32.totalorder %s1231_s16, %s968_s4  ;;  %s973_s27 = scalar_lea.hbm %s1848_s1, 2048 }
  0x36   : > { %p974_p3 = scmp.lt.u32.totalorder %s1231_s16, %s1848_s1  ;;  %p975_p6 = scmp.lt.u32.totalorder %s973_s27, %s968_s4 }
  0x37   : > { %p971_p11 = pnand %p969_p9, %p940_p5  ;;  %p977_p10 = scmp.lt.u32.totalorder %s968_s4, %s1231_s16 }
  0x38   : > { %p976_p4 = por %p975_p6, %p974_p3 }
  0x39   : > { %p972_p13 = pneg %p971_p11 }
  0x3a   : > { %p978_p12 = por %p977_p10, %p976_p4 }
  0x3c   : > { %p979_p1 = pnand %p978_p12, %p972_p13 }
  0x3e   : > { %982 = shalt.err (!%p979_p1)
}
  0x3f   : > { %s983_s25 = scalar_lea.vmem %s167_s19, 1024  ;;  %s1087_s26 = smov [#allocation6]  }
  0x40   : > { %p984_p2 = scmp.ne.s32.totalorder %s167_s19, %s983_s25  ;;  %s988_s3 = sshll.u32 %s1087_s26, 4  ;;  %s989_s3 = int_to_ptr.vmem [resolvable:$false] %s988_s3 }
  0x41   : > { %s990_s8 = scalar_lea.vmem %s989_s3, 2048  ;;  %p991_p8 = scmp.lt.s32.totalorder %s167_s19, %s989_s3 }
  0x42   : > { %p986_p9 = pnand %p984_p2, %p940_p5  ;;  %p992_p7 = scmp.lt.s32.totalorder %s990_s8, %s983_s25 }
  0x44   : > { %p987_p11 = pneg %p986_p9  ;;  %p993_p3 = por %p992_p7, %p991_p8 }
  0x46   : > { %p994_p6 = pnand %p993_p3, %p987_p11 }
  0x48   : > { %997 = shalt.err (!%p994_p6)
}
  0x49   : > { %819 = dma.hbm_to_vmem [thread:$0]  (!%p1186_p0), %s1231_s16, 1024, %s167_s19, %s154_s30  }
  0x4a   : > { %p1865_p13 = scmp.ne.s32.totalorder %s1864_s7, 0 }
  0x4c   : > { %175 = sbr.rel (%p1865_p13) target bundleno = 411 (0x19b), region = 28 }
  0x53   : > { %s1258_s15 = sand.u32 1, %s1068_s10   ;;  %p1866_p5 = scmp.ne.s32.totalorder %s1858_s21, 0 }
  0x54   : > { %s797_s18 = sshll.u32 %s1258_s15, 6  ;;  %s178_s4 = scalar_lea.sflag [#allocation4], %s1258_s15 }
  0x55   : > { %s181_s6 = scalar_lea.vmem [#allocation3], %s797_s18 }
  0x56   : > { %1051 = dma.done.wait (%p1866_p5), %s178_s4, 1024  }
  0x57   : > { %1053 = vsyncadd (%p1866_p5), %s178_s4, 4294966272  ;;  %s187_s5 = scalar_lea.sflag [#allocation7], %s1258_s15  ;;  %s1267_s16 = scalar_lea.vmem [#allocation6], %s797_s18 }
  0x58   : > { %1055 = dma.done.wait (%p1866_p5), %s187_s5, 1024  }
  0x59   : > { %1057 = vsyncadd (%p1866_p5), %s187_s5, 4294966272  ;;  %v583_v0 = vlaneseq  ;;  %v1273_v1 = vld [vmem:[%s181_s6] sm:$0xff]  ;;  %v1275_v2 = vld [vmem:[%s181_s6 + $0x8] sm:$0xff]  ;;  %s799_s7 = sshll.u32 %s1076_s12, 13  ;;  %s800_s21 = sshll.u32 %s1076_s12, 4 }
  0x5a   : > { %v1277_v3 = vld [vmem:[%s181_s6 + $0x10] sm:$0xff]  ;;  %v1279_v4 = vld [vmem:[%s181_s6 + $0x18] sm:$0xff]  ;;  %v245_v5 = vand.u32 2147483647, %v1273_v1  ;;  %v1283_v7 = vld [vmem:[%s181_s6 + $0x20] sm:$0xff]  ;;  %v586_v16 = vstv %s799_s7  ;;  %v277_v46 = vmax.f32 %v1273_v1, 0.0  ;;  %s1798_s28 = scalar_lea.hbm %s1849_s2, %s800_s21 }
  0x5b   : > { %v584_v6 = vshrl.u32 %v583_v0, 7  ;;  %v1285_v8 = vld [vmem:[%s181_s6 + $0x28] sm:$0xff]  ;;  %v246_v9 = vand.u32 2147483647, %v1275_v2  ;;  %v1288_v10 = vld [vmem:[%s181_s6 + $0x30] sm:$0xff]  ;;  %v1290_v11 = vld [vmem:[%s181_s6 + $0x38] sm:$0xff] }
  0x5c   : > { %v247_v12 = vand.u32 2147483647, %v1277_v3  ;;  %v253_v13 = vsub.f32 0.0, %v245_v5  ;;  %v248_v14 = vand.u32 2147483647, %v1279_v4  ;;  %v589_v24 = vand.u32 127, %v583_v0 }
  0x5d   : > { %v254_v15 = vsub.f32 0.0, %v246_v9  ;;  %v249_v17 = vand.u32 2147483647, %v1283_v7  ;;  %v250_v18 = vand.u32 2147483647, %v1285_v8  ;;  %v585_v20 = vmul.u32 1024, %v584_v6 }
  0x5e   : > { %v255_v19 = vsub.f32 0.0, %v247_v12  ;;  %v251_v21 = vand.u32 2147483647, %v1288_v10  ;;  %v252_v22 = vand.u32 2147483647, %v1290_v11  ;;  %v256_v23 = vsub.f32 0.0, %v248_v14 }
  0x5f   : > { %v257_v25 = vsub.f32 0.0, %v249_v17  ;;  %v258_v26 = vsub.f32 0.0, %v250_v18  ;;  %v261_v27 = vmul.f32 1.442695, %v253_v13  ;;  %v263_v28 = vmul.f32 1.442695, %v254_v15 }
  0x60   : > { %v259_v29 = vsub.f32 0.0, %v251_v21  ;;  %v265_v30 = vmul.f32 1.442695, %v255_v19  ;;  %v267_v31 = vmul.f32 1.442695, %v256_v23  ;;  %v1298_v33 = vadd.s32 %v586_v16, %v585_v20  ;;  %v1305_v43 = vld [vmem:[%s1267_s16] sm:$0xff] }
  0x61   : > { %874 = vpow2.f32 %v261_v27  ;;  %v269_v32 = vmul.f32 1.442695, %v257_v25  ;;  %v590_v34 = vadd.s32 128, %v589_v24  ;;  %v591_v35 = vadd.s32 256, %v589_v24  ;;  %v1308_v44 = vld [vmem:[%s1267_s16 + $0x8] sm:$0xff]  ;;  %v1311_v45 = vld [vmem:[%s1267_s16 + $0x10] sm:$0xff] }
  0x62   : > { %1867 = vst [vmem:[#allocation12_spill] sm:$0xff] %v1298_v33  ;;  %876 = vpow2.f32 %v263_v28  ;;  %v592_v36 = vadd.s32 384, %v589_v24  ;;  %v260_v37 = vsub.f32 0.0, %v252_v22  ;;  %v271_v38 = vmul.f32 1.442695, %v258_v26  ;;  %v1320_v49 = vld [vmem:[%s1267_s16 + $0x18] sm:$0xff] }
  0x63   : > { %878 = vpow2.f32 %v265_v30  ;;  %v593_v39 = vadd.s32 512, %v589_v24  ;;  %v273_v40 = vmul.f32 1.442695, %v259_v29  ;;  %v1300_v41 = vadd.s32 640, %v589_v24  ;;  %v1333_v57 = vld [vmem:[%s1267_s16 + $0x20] sm:$0xff]  ;;  %v1336_v58 = vld [vmem:[%s1267_s16 + $0x28] sm:$0xff] }
  0x64   : > { %880 = vpow2.f32 %v267_v31  ;;  %v1302_v42 = vadd.s32 768, %v589_v24  ;;  %v1314_v47 = vadd.s32 896, %v589_v24  ;;  %v1317_v48 = vadd.s32 %v589_v24, %v1298_v33  ;;  %v1339_v59 = vld [vmem:[%s1267_s16 + $0x30] sm:$0xff]  ;;  %v1345_v63 = vld [vmem:[%s1267_s16 + $0x38] sm:$0xff]  ;;  %s214_s19 = scalar_lea.vmem [#allocation8], %s1258_s15  ;;  %s675_s25 = scalar_lea.sflag [#allocation5], %s1258_s15 }
  0x65   : > { %1868 = vst [vmem:[#allocation13_spill] sm:$0xff] %v1300_v41  ;;  %882 = vpow2.f32 %v269_v32  ;;  %v278_v50 = vmax.f32 %v1275_v2, 0.0  ;;  %v285_v51 = vmul.f32 %v1305_v43, %v1273_v1  ;;  %v286_v52 = vmul.f32 %v1308_v44, %v1275_v2  ;;  %s687_s30 = sshll.u32 %s214_s19, 4  ;;  %p1927_p0 = scmp.ne.s32.totalorder %s1859_s22, 0  ;;  %s1800_s30 = int_to_ptr.vmem [resolvable:$true] %s687_s30 }
  0x66   : > { %1869 = vst [vmem:[#allocation14_spill] sm:$0xff] %v1302_v42  ;;  %1870 = vst [vmem:[#allocation15_spill] sm:$0xff] %v1314_v47  ;;  %v287_v53 = vmul.f32 %v1311_v45, %v1277_v3  ;;  %884 = vpow2.f32 %v271_v38  ;;  %v275_v54 = vmul.f32 1.442695, %v260_v37  ;;  %v279_v55 = vmax.f32 %v1277_v3, 0.0  ;;  %s998_s26 = scalar_lea.vmem %s1800_s30, 16 }
  0x67   : > { %1871 = vst [vmem:[#allocation16_spill] sm:$0xff] %v1317_v48  ;;  %v288_v56 = vmul.f32 %v1320_v49, %v1279_v4  ;;  %886 = vpow2.f32 %v273_v40  ;;  %v280_v60 = vmax.f32 %v1279_v4, 0.0  ;;  %v281_v61 = vmax.f32 %v1283_v7, 0.0  ;;  %p999_p8 = scmp.ne.s32.totalorder %s1800_s30, %s998_s26  ;;  %s1088_s12 = smov [#allocation8]  }
  0x68   : > { %v282_v62 = vmax.f32 %v1285_v8, 0.0  ;;  %v283_v0 = vmax.f32 %v1288_v10, 0.0  ;;  %v289_v5 = vmul.f32 %v1333_v57, %v1283_v7  ;;  %v290_v6 = vmul.f32 %v1336_v58, %v1285_v8  ;;  %s1002_s3 = sshll.u32 %s1088_s12, 4  ;;  %s1003_s3 = int_to_ptr.vmem [resolvable:$false] %s1002_s3 }
  0x69   : > { %v291_v9 = vmul.f32 %v1339_v59, %v1288_v10  ;;  %v284_v12 = vmax.f32 %v1290_v11, 0.0  ;;  %v292_v13 = vmul.f32 %v1345_v63, %v1290_v11  ;;  %v1358_v14 = vadd.s32 %v590_v34, %v1298_v33  ;;  %p1000_p7 = pnand %p999_p8, %p1927_p0  ;;  %s1004_s8 = scalar_lea.vmem %s1003_s3, 32 }
  0x6a   : > { %v1361_v15 = vadd.s32 %v591_v35, %v1298_v33  ;;  %888 = vpow2.f32 %v275_v54  ;;  %v1365_v17 = vsub.f32 %v277_v46, %v285_v51  ;;  %v1368_v18 = vadd.s32 %v592_v36, %v1298_v33  ;;  %p1005_p10 = scmp.lt.s32.totalorder %s1800_s30, %s1003_s3  ;;  %p1006_p12 = scmp.lt.s32.totalorder %s1004_s8, %s998_s26 }
  0x6b   : > { %1872 = vst [vmem:[#allocation17_spill] sm:$0xff] %v1358_v14  ;;  %v1363_v16 = vpop.eup %874  ;;  %v1371_v19 = vadd.s32 %v593_v39, %v1298_v33  ;;  %v1375_v21 = vsub.f32 %v278_v50, %v286_v52  ;;  %v1377_v22 = vsub.f32 %v279_v55, %v287_v53  ;;  %v1379_v23 = vsub.f32 %v280_v60, %v288_v56  ;;  %p1001_p4 = pneg %p1000_p7 }
  0x6c   : > { %1873 = vst [vmem:[#allocation18_spill] sm:$0xff] %v1361_v15  ;;  %1874 = vst [vmem:[#allocation19_spill] sm:$0xff] %v1368_v18  ;;  %v1373_v20 = vpop.eup %876  ;;  %v1382_v24 = vadd.f32 1.0, %v1363_v16  ;;  %v1386_v26 = vsub.f32 %v281_v61, %v289_v5  ;;  %v1388_v27 = vsub.f32 %v282_v62, %v290_v6  ;;  %v1390_v28 = vsub.f32 %v283_v0, %v291_v9  ;;  %p1007_p1 = por %p1006_p12, %p1005_p10 }
  0x6d   : > { %1875 = vst [vmem:[#allocation20_spill] sm:$0xff] %v1371_v19  ;;  %v1384_v25 = vpop.eup %878  ;;  %v1393_v29 = vadd.f32 1.0, %v1373_v20  ;;  %v1397_v31 = vsub.f32 %v284_v12, %v292_v13  ;;  %v304_v36 = vmul.f32 -0.5, %v1363_v16  ;;  %v313_v37 = vmul.f32 -0.5, %v1373_v20 }
  0x6e   : > { %1876 = vst [vmem:[#allocation21_spill] sm:$0xff] %v1390_v28  ;;  %v1395_v30 = vpop.eup %880  ;;  %890 = vlog2.f32 %v1382_v24  ;;  %v1401_v32 = vadd.f32 1.0, %v1384_v25  ;;  %v322_v51 = vmul.f32 -0.5, %v1384_v25  ;;  %v307_v56 = vand.u32 2147483647, %v1363_v16  ;;  %p1008_p2 = pnand %p1007_p1, %p1001_p4 }
  0x6f   : > { %1877 = vst [vmem:[#allocation22_spill] sm:$0xff] %v1395_v30  ;;  %1878 = vst [vmem:[#allocation23_spill] sm:$0xff] %v1397_v31  ;;  %v1404_v35 = vpop.eup %882  ;;  %892 = vlog2.f32 %v1393_v29  ;;  %v1412_v39 = vadd.f32 1.0, %v1395_v30  ;;  %v331_v60 = vmul.f32 -0.5, %v1395_v30  ;;  %v305_v62 = vadd.f32 1.0, %v304_v36 }
  0x70   : > { %894 = vlog2.f32 %v1401_v32  ;;  %v1416_v50 = vpop.eup %884  ;;  %v337_v61 = vadd.f32 1.0, %v1404_v35  ;;  %v314_v0 = vadd.f32 1.0, %v313_v37  ;;  %v316_v5 = vand.u32 2147483647, %v1373_v20 }
  0x71   : > { %v1422_v55 = vpop.eup %886  ;;  %896 = vlog2.f32 %v1412_v39  ;;  %v325_v9 = vand.u32 2147483647, %v1384_v25  ;;  %v340_v12 = vmul.f32 -0.5, %v1404_v35  ;;  %v346_v13 = vadd.f32 1.0, %v1416_v50 }
  0x72   : > { %898 = vlog2.f32 %v337_v61  ;;  %v323_v53 = vadd.f32 1.0, %v322_v51  ;;  %v334_v52 = vand.u32 2147483647, %v1395_v30  ;;  %v355_v46 = vadd.f32 1.0, %v1422_v55 }
  0x73   : > { %v1438_v36 = vmul.f32 0.25, %v1305_v43  ;;  %vm1440_vm0 = vcmp.lt.f32.partialorder %v307_v56, 0.0004427343  ;;  %v332_v6 = vadd.f32 1.0, %v331_v60  ;;  %900 = vlog2.f32 %v346_v13 }
  0x74   : > { %v1433_v54 = vpop.eup %888  ;;  %v349_v40 = vmul.f32 -0.5, %v1416_v50  ;;  %v306_v38 = vmul.f32 %v1363_v16, %v305_v62  ;;  %vm1446_vm1 = vcmp.lt.f32.partialorder %v316_v5, 0.0004427343  ;;  %v343_v51 = vand.u32 2147483647, %v1404_v35 }
  0x75   : > { %1879 = vst [vmem:[#allocation24_spill] sm:$0xff] %v1438_v36  ;;  %902 = vlog2.f32 %v355_v46  ;;  %v315_v19 = vmul.f32 %v1373_v20, %v314_v0  ;;  %vm1452_vm2 = vcmp.lt.f32.partialorder %v325_v9, 0.0004427343  ;;  %v341_v60 = vadd.f32 1.0, %v340_v12 }
  0x76   : > { %v364_v42 = vadd.f32 1.0, %v1433_v54  ;;  %v324_v62 = vmul.f32 %v1384_v25, %v323_v53  ;;  %vm1458_vm3 = vcmp.lt.f32.partialorder %v334_v52, 0.0004427343  ;;  %v352_v41 = vand.u32 2147483647, %v1416_v50 }
  0x77   : > { %v358_v33 = vmul.f32 -0.5, %v1422_v55  ;;  %v333_v0 = vmul.f32 %v1395_v30, %v332_v6  ;;  %v350_v9 = vadd.f32 1.0, %v349_v40  ;;  %v367_v12 = vmul.f32 -0.5, %v1433_v54 }
  0x78   : > { %v891_v47 = vpop.eup %890  ;;  %904 = vlog2.f32 %v364_v42  ;;  %vm1466_vm4 = vcmp.lt.f32.partialorder %v343_v51, 0.0004427343  ;;  %v361_v52 = vand.u32 2147483647, %v1422_v55  ;;  %v342_v28 = vmul.f32 %v1404_v35, %v341_v60 }
  0x79   : > { %v893_v18 = vpop.eup %892  ;;  %v303_v14 = vmul.f32 0.6931472, %v891_v47  ;;  %906 = vrcp.f32 %v1382_v24  ;;  %vm1474_vm5 = vcmp.lt.f32.partialorder %v352_v41, 0.0004427343  ;;  %v359_v47 = vadd.f32 1.0, %v358_v33 }
  0x7a   : > { %v895_v15 = vpop.eup %894  ;;  %v312_v31 = vmul.f32 0.6931472, %v893_v18  ;;  %908 = vrcp.f32 %v1393_v29  ;;  %vm405_vm6 = vcmp.ge.f32.partialorder %v1273_v1, 0.0  ;;  %v351_v24 = vmul.f32 %v1416_v50, %v350_v9 }
  0x7b   : > { %v897_v53 = vpop.eup %896  ;;  %v321_v36 = vmul.f32 0.6931472, %v895_v15  ;;  %910 = vrcp.f32 %v1401_v32  ;;  %v368_v30 = vadd.f32 1.0, %v367_v12  ;;  %v370_v15 = vand.u32 2147483647, %v1433_v54 }
  0x7c   : > { %v330_v40 = vmul.f32 0.6931472, %v897_v53  ;;  %v899_v51 = vpop.eup %898  ;;  %912 = vrcp.f32 %v1412_v39  ;;  %vm406_vm7 = vcmp.ge.f32.partialorder %v1275_v2, 0.0  ;;  %v309_v41 = vsel %vm1440_vm0, %v306_v38, %v303_v14 }
  0x7d   : > { %v339_v18 = vmul.f32 0.6931472, %v899_v51  ;;  %vm1486_vm8 = vcmp.lt.f32.partialorder %v361_v52, 0.0004427343  ;;  %914 = vrcp.f32 %v337_v61  ;;  %vm407_vm9 = vcmp.ge.f32.partialorder %v1277_v3, 0.0  ;;  %v901_v29 = vpop.eup %900 }
  0x7e   : > { %v318_v32 = vsel %vm1446_vm1, %v315_v19, %v312_v31  ;;  %v327_v39 = vsel %vm1452_vm2, %v324_v62, %v321_v36  ;;  %916 = vrcp.f32 %v346_v13  ;;  %vm408_vm10 = vcmp.ge.f32.partialorder %v1279_v4, 0.0 }
  0x7f   : > { %v1497_v14 = vmul.f32 0.25, %v1308_v44  ;;  %v903_v38 = vpop.eup %902  ;;  %v336_v37 = vsel %vm1458_vm3, %v333_v0, %v330_v40  ;;  %v348_v61 = vmul.f32 0.6931472, %v901_v29  ;;  %v1502_v60 = vmul.f32 %v1422_v55, %v359_v47 }
  0x80   : > { %918 = vrcp.f32 %v355_v46  ;;  %vm409_vm11 = vcmp.ge.f32.partialorder %v1283_v7, 0.0  ;;  %v1506_v19 = vmul.f32 %v1433_v54, %v368_v30  ;;  %v1509_v31 = vadd.f32 %v309_v41, %v1365_v17 }
  0x81   : > { %920 = vrcp.f32 %v364_v42  ;;  %vm410_vm12 = vcmp.ge.f32.partialorder %v1285_v8, 0.0  ;;  %v1513_v34 = vmul.f32 0.25, %v1311_v45  ;;  %v345_v13 = vsel %vm1466_vm4, %v342_v28, %v339_v18 }
  0x82   : > { %v1517_v36 = vmul.f32 0.6931472, %v903_v38  ;;  %v1520_v46 = vadd.f32 %v318_v32, %v1375_v21  ;;  %v1523_v30 = vadd.f32 %v327_v39, %v1377_v22  ;;  %vm411_vm13 = vcmp.ge.f32.partialorder %v1288_v10, 0.0  ;;  %v905_v17 = vpop.eup %904 }
  0x83   : > { %v1527_v42 = vadd.f32 %v336_v37, %v1379_v23  ;;  %vm412_vm14 = vcmp.ge.f32.partialorder %v1290_v11, 0.0  ;;  %v1531_v56 = vmul.f32 0.25, %v1320_v49  ;;  %v1534_v48 = vmul.f32 0.25, %v1333_v57  ;;  %v907_v28 = vpop.eup %906 }
  0x84   : > { %v1537_v21 = vmul.f32 0.25, %v1336_v58  ;;  %v354_v22 = vsel %vm1474_vm5, %v351_v24, %v348_v61  ;;  %v1542_v62 = vmul.f32 0.25, %v1339_v59  ;;  %v1545_v23 = vmul.f32 0.25, %v1345_v63  ;;  %v909_v9 = vpop.eup %908  ;;  %v1899_v61 = vld [vmem:[#allocation22_spill] sm:$0xff] }
  0x85   : > { %v1894_v5 = vsub.f32 1.0, %v1305_v43  ;;  %v1552_v12 = vadd.f32 %v345_v13, %v1386_v26  ;;  %v413_v52 = vmul.f32 %v907_v28, %v1363_v16  ;;  %v1895_v53 = vsub.f32 1.0, %v1308_v44  ;;  %v911_v51 = vpop.eup %910 }
  0x86   : > { %v1896_v6 = vsub.f32 1.0, %v1311_v45  ;;  %v363_v24 = vsel %vm1486_vm8, %v1502_v60, %v1517_v36  ;;  %v414_v41 = vmul.f32 %v909_v9, %v1373_v20  ;;  %v1897_v26 = vsub.f32 1.0, %v1320_v49  ;;  %v913_v32 = vpop.eup %912 }
  0x87   : > { %v1549_v0 = vmul.f32 0.75, %v1894_v5  ;;  %v1557_v40 = vmul.f32 0.75, %v1895_v53  ;;  %v1898_v16 = vsub.f32 1.0, %v1333_v57  ;;  %v1576_v39 = vmul.f32 0.6931472, %v905_v17  ;;  %v915_v20 = vpop.eup %914 }
  0x88   : > { %v1561_v47 = vmul.f32 0.75, %v1896_v6  ;;  %v1570_v18 = vmul.f32 0.75, %v1897_v26  ;;  %v1579_v38 = vadd.f32 %v354_v22, %v1388_v27  ;;  %v415_v37 = vmul.f32 %v911_v51, %v1384_v25  ;;  %v917_v53 = vpop.eup %916 }
  0x89   : > { %v1574_v29 = vmul.f32 0.75, %v1898_v16  ;;  %v421_v33 = vsel %vm405_vm6, %v907_v28, %v413_v52  ;;  %v416_v60 = vmul.f32 %v913_v32, %v1899_v61  ;;  %v422_v13 = vsel %vm406_vm7, %v909_v9, %v414_v41 }
  0x8a   : > { %v429_v36 = vmul.f32 %v421_v33, %v1305_v43  ;;  %v445_v5 = vsub.f32 1.0, %v421_v33  ;;  %vm1588_vm15 = vcmp.lt.f32.partialorder %v370_v15, 0.0004427343  ;;  %v417_v27 = vmul.f32 %v915_v20, %v1404_v35  ;;  %v919_v22 = vpop.eup %918 }
  0x8b   : > { %v423_v1 = vsel %vm407_vm9, %v911_v51, %v415_v37  ;;  %v430_v25 = vmul.f32 %v422_v13, %v1308_v44  ;;  %v446_v28 = vsub.f32 1.0, %v422_v13  ;;  %v418_v2 = vmul.f32 %v917_v53, %v1416_v50  ;;  %v921_v6 = vpop.eup %920 }
  0x8c   : > { %v424_v9 = vsel %vm408_vm10, %v913_v32, %v416_v60  ;;  %v431_v52 = vmul.f32 %v423_v1, %v1311_v45  ;;  %v447_v15 = vsub.f32 1.0, %v423_v1  ;;  %v419_v41 = vmul.f32 %v919_v22, %v1422_v55 }
  0x8d   : > { %v425_v35 = vsel %vm409_vm11, %v915_v20, %v417_v27  ;;  %v432_v3 = vmul.f32 %v424_v9, %v1320_v49  ;;  %v448_v51 = vsub.f32 1.0, %v424_v9  ;;  %v420_v26 = vmul.f32 %v921_v6, %v1433_v54 }
  0x8e   : > { %v426_v50 = vsel %vm410_vm12, %v917_v53, %v418_v2  ;;  %v433_v4 = vmul.f32 %v425_v35, %v1333_v57  ;;  %v449_v16 = vsub.f32 1.0, %v425_v35  ;;  %v427_v32 = vsel %vm411_vm13, %v919_v22, %v419_v41 }
  0x8f   : > { %v434_v37 = vmul.f32 %v426_v50, %v1336_v58  ;;  %v450_v55 = vsub.f32 1.0, %v426_v50  ;;  %v1902_v7 = vsub.f32 1.0, %v1305_v43  ;;  %v428_v20 = vsel %vm412_vm14, %v921_v6, %v420_v26 }
  0x90   : > { %v435_v54 = vmul.f32 %v427_v32, %v1339_v59  ;;  %v451_v61 = vsub.f32 1.0, %v427_v32  ;;  %v1903_v8 = vsub.f32 1.0, %v1308_v44  ;;  %v436_v13 = vmul.f32 %v428_v20, %v1345_v63 }
  0x91   : > { %v453_v33 = vmul.f32 %v445_v5, %v1902_v7  ;;  %v452_v53 = vsub.f32 1.0, %v428_v20  ;;  %v1904_v10 = vsub.f32 1.0, %v1311_v45  ;;  %v1905_v1 = vsub.f32 1.0, %v1320_v49 }
  0x92   : > { %v454_v60 = vmul.f32 %v446_v28, %v1903_v8  ;;  %v1906_v43 = vsub.f32 1.0, %v1333_v57  ;;  %v1907_v11 = vsub.f32 1.0, %v1336_v58  ;;  %v1908_v9 = vsub.f32 1.0, %v1339_v59 }
  0x93   : > { %v455_v27 = vmul.f32 %v447_v15, %v1904_v10  ;;  %v456_v22 = vmul.f32 %v448_v51, %v1905_v1  ;;  %v461_v44 = vadd.f32 %v453_v33, %v429_v36  ;;  %v1909_v28 = vsub.f32 1.0, %v1345_v63  ;;  %v1910_v15 = vld [vmem:[#allocation21_spill] sm:$0xff]  ;;  %v1914_v33 = vld [vmem:[#allocation24_spill] sm:$0xff] }
  0x94   : > { %v457_v5 = vmul.f32 %v449_v16, %v1906_v43  ;;  %v458_v2 = vmul.f32 %v450_v55, %v1907_v11  ;;  %v459_v6 = vmul.f32 %v451_v61, %v1908_v9  ;;  %v462_v35 = vadd.f32 %v454_v60, %v430_v25 }
  0x95   : > { %v460_v41 = vmul.f32 %v452_v53, %v1909_v28  ;;  %v463_v26 = vadd.f32 %v455_v27, %v431_v52  ;;  %v464_v45 = vadd.f32 %v456_v22, %v432_v3  ;;  %v1632_v50 = vadd.f32 %v363_v24, %v1910_v15 }
  0x96   : > { %v465_v49 = vadd.f32 %v457_v5, %v433_v4  ;;  %v466_v51 = vadd.f32 %v458_v2, %v434_v37  ;;  %v1911_v57 = vmov %v1907_v11  ;;  %v467_v32 = vadd.f32 %v459_v6, %v435_v54 }
  0x97   : > { %v482_v16 = vmul.f32 0.75, %v1911_v57  ;;  %v1636_v55 = vsub.f32 1.0, %v461_v44  ;;  %v1638_v7 = vsub.f32 1.0, %v462_v35  ;;  %v1640_v36 = vsub.f32 1.0, %v463_v26 }
  0x98   : > { %v372_v25 = vsel %vm1588_vm15, %v1506_v19, %v1576_v39  ;;  %v468_v52 = vadd.f32 %v460_v41, %v436_v13  ;;  %v1912_v24 = vmov %v1908_v9  ;;  %v1648_v4 = vsub.f32 1.0, %v464_v45  ;;  %v1915_v39 = vld [vmem:[#allocation23_spill] sm:$0xff] }
  0x99   : > { %v483_v3 = vmul.f32 0.75, %v1912_v24  ;;  %v1913_v58 = vmov %v1909_v28  ;;  %v485_v20 = vadd.f32 %v1549_v0, %v1914_v33  ;;  %v1654_v54 = vsub.f32 1.0, %v465_v49  ;;  %v1916_v28 = vld [vmem:[#allocation16_spill] sm:$0xff] }
  0x9a   : > { %v484_v37 = vmul.f32 0.75, %v1913_v58  ;;  %922 = vrsqrt.f32 %v1636_v55  ;;  %v486_v17 = vadd.f32 %v1557_v40, %v1497_v14  ;;  %v487_v19 = vadd.f32 %v1561_v47, %v1513_v34 }
  0x9b   : > { %v1661_v59 = vsub.f32 1.0, %v466_v51  ;;  %924 = vrsqrt.f32 %v1638_v7  ;;  %v1665_v63 = vadd.f32 %v372_v25, %v1915_v39  ;;  %v488_v0 = vadd.f32 %v1570_v18, %v1531_v56 }
  0x9c   : > { %v1669_v61 = vsub.f32 1.0, %v467_v32  ;;  %926 = vrsqrt.f32 %v1640_v36  ;;  %v489_v14 = vadd.f32 %v1574_v29, %v1534_v48  ;;  %v490_v40 = vadd.f32 %v482_v16, %v1537_v21 }
  0x9d   : > { %v1675_v34 = vsub.f32 1.0, %v468_v52  ;;  %928 = vrsqrt.f32 %v1648_v4  ;;  %v1679_v47 = vadd.f32 %v483_v3, %v1542_v62  ;;  %v1682_v8 = vadd.f32 %v484_v37, %v1545_v23 }
  0x9e   : > { %vm503_vm0 = vcmp.eq.f32.partialorder %v1636_v55, inf  ;;  %930 = vrsqrt.f32 %v1654_v54  ;;  %vm505_vm1 = vcmp.eq.f32.partialorder %v1636_v55, 0.0  ;;  %v506_v56 = vand.u32 2147483648, %v1636_v55 }
  0x9f   : > { %vm510_vm2 = vcmp.eq.f32.partialorder %v1638_v7, inf  ;;  %932 = vrsqrt.f32 %v1661_v59  ;;  %vm512_vm3 = vcmp.eq.f32.partialorder %v1638_v7, 0.0  ;;  %v513_v48 = vand.u32 2147483648, %v1638_v7 }
  0xa0   : > { %vm517_vm4 = vcmp.eq.f32.partialorder %v1640_v36, inf  ;;  %934 = vrsqrt.f32 %v1669_v61  ;;  %vm519_vm5 = vcmp.eq.f32.partialorder %v1640_v36, 0.0  ;;  %v520_v21 = vand.u32 2147483648, %v1640_v36 }
  0xa1   : > { %vm524_vm6 = vcmp.eq.f32.partialorder %v1648_v4, inf  ;;  %936 = vrsqrt.f32 %v1675_v34  ;;  %vm526_vm7 = vcmp.eq.f32.partialorder %v1648_v4, 0.0  ;;  %v527_v62 = vand.u32 2147483648, %v1648_v4 }
  0xa2   : > { %vm531_vm8 = vcmp.eq.f32.partialorder %v1654_v54, inf  ;;  %vm533_vm9 = vcmp.eq.f32.partialorder %v1654_v54, 0.0  ;;  %v534_v23 = vand.u32 2147483648, %v1654_v54  ;;  %vm538_vm10 = vcmp.eq.f32.partialorder %v1661_v59, inf }
  0xa3   : > { %vm540_vm11 = vcmp.eq.f32.partialorder %v1661_v59, 0.0  ;;  %v541_v18 = vand.u32 2147483648, %v1661_v59  ;;  %vm545_vm12 = vcmp.eq.f32.partialorder %v1669_v61, inf  ;;  %vm547_vm13 = vcmp.eq.f32.partialorder %v1669_v61, 0.0 }
  0xa4   : > { %v923_v29 = vpop.eup %922  ;;  %v548_v60 = vand.u32 2147483648, %v1669_v61  ;;  %v555_v10 = vand.u32 2147483648, %v1675_v34  ;;  %v565_v27 = vmul.f32 %v485_v20, %v1509_v31  ;;  %v566_v1 = vmul.f32 %v486_v17, %v1520_v46 }
  0xa5   : > { %v925_v13 = vpop.eup %924  ;;  %v502_v53 = vmul.f32 %v923_v29, %v1636_v55  ;;  %v567_v5 = vmul.f32 %v487_v19, %v1523_v30  ;;  %v568_v11 = vmul.f32 %v488_v0, %v1527_v42  ;;  %v569_v2 = vmul.f32 %v489_v14, %v1552_v12  ;;  %v1917_v12 = vld [vmem:[#allocation17_spill] sm:$0xff]  ;;  %v1923_v29 = vld [vmem:[#allocation19_spill] sm:$0xff] }
  0xa6   : > { %v927_v22 = vpop.eup %926  ;;  %v509_v43 = vmul.f32 %v925_v13, %v1638_v7  ;;  %v570_v31 = vmul.f32 %v490_v40, %v1579_v38  ;;  %vm605_vm15 = vcmp.lt.s32.totalorder %v1916_v28, 512  ;;  %vm606_vm14 = vcmp.lt.s32.totalorder %v1917_v12, 512  ;;  %v1919_v40 = vld [vmem:[#allocation18_spill] sm:$0xff] }
  0xa7   : > { %v929_v9 = vpop.eup %928  ;;  %v504_v6 = vsel %vm503_vm0, %v1636_v55, %v502_v53  ;;  %v516_v44 = vmul.f32 %v927_v22, %v1640_v36  ;;  %vm1918_vm0 = vcmp.eq.f32.partialorder %v1675_v34, inf }
  0xa8   : > { %v931_v46 = vpop.eup %930  ;;  %v507_v41 = vsel %vm505_vm1, %v506_v56, %v504_v6  ;;  %v511_v30 = vsel %vm510_vm2, %v1638_v7, %v509_v43  ;;  %v523_v42 = vmul.f32 %v929_v9, %v1648_v4  ;;  %vm607_vm1 = vcmp.lt.s32.totalorder %v1919_v40, 512 }
  0xa9   : > { %v933_v35 = vpop.eup %932  ;;  %v514_v26 = vsel %vm512_vm3, %v513_v48, %v511_v30  ;;  %v518_v38 = vsel %vm517_vm4, %v1640_v36, %v516_v44  ;;  %v530_v45 = vmul.f32 %v931_v46, %v1654_v54  ;;  %v557_v15 = vmul.f32 %v507_v41, %v1636_v55 }
  0xaa   : > { %v935_v49 = vpop.eup %934  ;;  %v521_v51 = vsel %vm519_vm5, %v520_v21, %v518_v38  ;;  %v525_v57 = vsel %vm524_vm6, %v1648_v4, %v523_v42  ;;  %v537_v16 = vmul.f32 %v933_v35, %v1661_v59  ;;  %v558_v32 = vmul.f32 %v514_v26, %v1638_v7 }
  0xab   : > { %v937_v25 = vpop.eup %936  ;;  %v528_v52 = vsel %vm526_vm7, %v527_v62, %v525_v57  ;;  %v532_v55 = vsel %vm531_vm8, %v1654_v54, %v530_v45  ;;  %v544_v24 = vmul.f32 %v935_v49, %v1669_v61  ;;  %v559_v3 = vmul.f32 %v521_v51, %v1640_v36  ;;  %v1921_v62 = vld [vmem:[#allocation12_spill] sm:$0xff] }
  0xac   : > { %v535_v58 = vsel %vm533_vm9, %v534_v23, %v532_v55  ;;  %v539_v37 = vsel %vm538_vm10, %v1661_v59, %v537_v16  ;;  %v551_v7 = vmul.f32 %v937_v25, %v1675_v34  ;;  %v560_v33 = vmul.f32 %v528_v52, %v1648_v4  ;;  %v1922_v23 = vld [vmem:[#allocation13_spill] sm:$0xff] }
  0xad   : > { %v542_v20 = vsel %vm540_vm11, %v541_v18, %v539_v37  ;;  %v546_v17 = vsel %vm545_vm12, %v1669_v61, %v544_v24  ;;  %v561_v36 = vmul.f32 %v535_v58, %v1654_v54  ;;  %v573_v19 = vmul.f32 %v565_v27, %v557_v15 }
  0xae   : > { %v549_v39 = vsel %vm547_vm13, %v548_v60, %v546_v17  ;;  %v553_v0 = vsel %vm1918_vm0, %v1675_v34, %v551_v7  ;;  %v574_v14 = vmul.f32 %v566_v1, %v558_v32  ;;  %v562_v4 = vmul.f32 %v542_v20, %v1661_v59  ;;  %v1925_v1 = vld [vmem:[#allocation20_spill] sm:$0xff] }
  0xaf   : > { %v571_v56 = vmul.f32 %v1679_v47, %v1632_v50  ;;  %v575_v48 = vmul.f32 %v567_v5, %v559_v3  ;;  %v576_v21 = vmul.f32 %v568_v11, %v560_v33  ;;  %vm1920_vm2 = vcmp.eq.f32.partialorder %v1675_v34, 0.0  ;;  %v1924_v47 = vld [vmem:[#allocation14_spill] sm:$0xff] }
  0xb0   : > { %v556_v54 = vsel %vm1920_vm2, %v555_v10, %v553_v0  ;;  %v602_v18 = vadd.s32 %v1922_v23, %v1921_v62  ;;  %vm608_vm3 = vcmp.lt.s32.totalorder %v1923_v29, 512  ;;  %v613_v60 = vsel %vm605_vm15, %v573_v19, 0.0 }
  0xb1   : > { %v563_v13 = vmul.f32 %v549_v39, %v1669_v61  ;;  %v577_v53 = vmul.f32 %v569_v2, %v561_v36  ;;  %v614_v59 = vsel %vm606_vm14, %v574_v14, 0.0  ;;  %v615_v50 = vsel %vm607_vm1, %v575_v48, 0.0  ;;  %v1926_v61 = vld [vmem:[#allocation15_spill] sm:$0xff] }
  0xb2   : > { %v603_v27 = vadd.s32 %v1924_v47, %v1921_v62  ;;  %vm609_vm4 = vcmp.lt.s32.totalorder %v1925_v1, 512  ;;  %v656_v10 = vadd.f32 %v614_v59, %v613_v60  ;;  %v564_v22 = vmul.f32 %v556_v54, %v1675_v34 }
  0xb3   : > { %v572_v43 = vmul.f32 %v1682_v8, %v1665_v63  ;;  %v578_v5 = vmul.f32 %v570_v31, %v562_v4  ;;  %v616_v11 = vsel %vm608_vm3, %v576_v21, 0.0  ;;  %v604_v2 = vadd.s32 %v1926_v61, %v1921_v62 }
  0xb4   : > { %vm610_vm5 = vcmp.lt.s32.totalorder %v602_v18, 512  ;;  %v657_v9 = vadd.f32 %v656_v10, %v615_v50  ;;  %v579_v6 = vmul.f32 %v571_v56, %v563_v13  ;;  %v617_v44 = vsel %vm609_vm4, %v577_v53, 0.0 }
  0xb5   : > { %vm611_vm6 = vcmp.lt.s32.totalorder %v603_v27, 512  ;;  %v580_v46 = vmul.f32 %v572_v43, %v564_v22  ;;  %v618_v41 = vsel %vm610_vm5, %v578_v5, 0.0  ;;  %vm612_vm7 = vcmp.lt.s32.totalorder %v604_v2, 512 }
  0xb6   : > { %v658_v28 = vadd.f32 %v657_v9, %v616_v11  ;;  %v619_v34 = vsel %vm611_vm6, %v579_v6, 0.0 }
  0xb7   : > { %v620_v63 = vsel %vm612_vm7, %v580_v46, 0.0 }
  0xb8   : > { %v659_v30 = vadd.f32 %v658_v28, %v617_v44 }
  0xba   : > { %v660_v42 = vadd.f32 %v659_v30, %v618_v41 }
  0xbc   : > { %v661_v8 = vadd.f32 %v660_v42, %v619_v34 }
  0xbe   : > { %v662_v31 = vadd.f32 %v661_v8, %v620_v63 }
  0xc0   : > { %663 = vadd.xlane.f32.xlu0 %v662_v31 }
 0x14d   : > { %v664_v12 = vpop.xlane.xlu0 %663 }
 0x14e   : > { %v665_v35 = vrot.slane %v664_v12, 4 }
 0x150   : > { %v666_v26 = vadd.f32 %v665_v35, %v664_v12 }
 0x152   : > { %v667_v38 = vrot.slane %v666_v26, 2 }
 0x154   : > { %v668_v45 = vadd.f32 %v667_v38, %v666_v26 }
 0x156   : > { %v669_v15 = vrot.slane %v668_v45, 1 }
 0x158   : > { %v670_v49 = vadd.f32 %v669_v15, %v668_v45 }
 0x15a   : > { %805 = vpush %v670_v49 }
 0x18b   : > { %s806_s29 = spop %805 }
 0x18c   : > { %v672_v51 = vstv %s806_s29 }
 0x18d   : > { %673 = vst [vmem:[%s214_s19] sm:$0x1] %v672_v51 }
 0x18e   : > { %1011 = shalt.err (!%p1008_p2)
}
 0x18f   : > { %s1012_s15 = scalar_lea.hbm %s1798_s28, 16  ;;  %s1016_s6 = scalar_lea.hbm %s1849_s2, 32 }
 0x190   : > { %p1013_p9 = scmp.ne.s32.totalorder %s1798_s28, %s1012_s15  ;;  %p1017_p6 = scmp.lt.u32.totalorder %s1798_s28, %s1849_s2 }
 0x191   : > { %p1018_p13 = scmp.lt.u32.totalorder %s1016_s6, %s1012_s15  ;;  %p1020_p8 = scmp.lt.u32.totalorder %s1012_s15, %s1798_s28 }
 0x192   : > { %p1014_p11 = pnand %p1013_p9, %p1927_p0 }
 0x193   : > { %p1019_p5 = por %p1018_p13, %p1017_p6 }
 0x194   : > { %p1015_p3 = pneg %p1014_p11 }
 0x195   : > { %p1021_p7 = por %p1020_p8, %p1019_p5 }
 0x197   : > { %p1022_p4 = pnand %p1021_p7, %p1015_p3 }
 0x199   : > { %1025 = shalt.err (!%p1022_p4)
}
 0x19a   : > { %811 = dma.vmem_to_hbm [thread:$0]  (%p1927_p0), %s1800_s30, 16, %s1798_s28, %s675_s25  }
 0x19b PF: > { %s699_s7 = sand.u32 1, %s1064_s9   ;;  %p1928_p10 = scmp.ne.s32.totalorder %s1860_s24, 0 }
 0x19c   : > { %p1929_p12 = scmp.ge.s32.totalorder %s1084_s14, 2  ;;  %s700_s21 = scalar_lea.sflag [#allocation5], %s699_s7 }
 0x19e   : > { %p821_p1 = pnand %p1929_p12, %p1928_p10 }
 0x1a0   : > { %1059 = dma.done.wait (!%p821_p1), %s700_s21, 16  }
 0x1a1   : > { %1061 = vsyncadd (!%p821_p1), %s700_s21, 4294967280  ;;  %s21_s14 = sadd.s32 1, %s1084_s14   ;;  %s1930_s9 = smov %s1068_s10 }
 0x1a2   : > { %p18_p2 = scmp.ge.s32.totalorder %s21_s14, 4   ;;  %s1931_s10 = smov %s1072_s11 }
 0x1a3   : > { %s1932_s11 = smov %s1160_s23  ;;  %s1933_s12 = smov %s1080_s13 }
 0x1a4   : > { %s1934_s13 = smov %s1936_s17  ;;  %20 = sbr.rel (!%p18_p2) target bundleno = 8 (0x8), region = 94 }
 0x1ab   :  { %704 = vsyncpa [#allocation4], 1 }
 0x1ac   :  { %706 = vsyncpa [#allocation4 + $0x1], 1 }
 0x1ad   :  { %707 = vsyncpa [#allocation7], 1 }
 0x1ae   :  { %709 = vsyncpa [#allocation7 + $0x1], 1 }
 0x1af   :  { %710 = vsyncpa [#allocation5], 1 }
 0x1b0   :  { %712 = vsyncpa [#allocation5 + $0x1], 1 }

</bundles_post_ra>
